<compile_context>
chip_gen: v7x
topology: tpu7x:2x2x1
jax: 0.10.0
libtpu: 0.0.40
codegen_flags: <defaults>
</compile_context>

<pallas_src>
import functools
import math

import jax
import jax.numpy as jnp
from jax.experimental import pallas as pl
from jax.experimental.pallas import tpu as pltpu


def _build_pe_table(d_model: int, max_len: int = 5000,
                    dtype=jnp.float32) -> jnp.ndarray:
    """Sinusoidal table identical to the PyTorch __init__, as (max_len, d_model).

    Built (and cast) once at init time in the target dtype so the forward pass
    never re-reads/re-writes the full table just to change dtype.
    """
    position = jnp.arange(0, max_len, dtype=jnp.float32)[:, None]          # (max_len, 1)
    div_term = jnp.exp(
        jnp.arange(0, d_model, 2, dtype=jnp.float32)
        * (-math.log(10000.0) / d_model)
    )                                                                        # (ceil(d/2),)
    ang = position * div_term                                                # (max_len, ceil(d/2))
    pe = jnp.zeros((max_len, d_model), dtype=jnp.float32)
    pe = pe.at[:, 0::2].set(jnp.sin(ang))
    pe = pe.at[:, 1::2].set(jnp.cos(ang)[:, : d_model // 2])                 # exact for even d_model
    return pe.astype(dtype)


def _pos_enc_kernel(x_ref, pe_ref, o_ref, *, batch: int, d_model: int):
    # x_ref/o_ref: (tS, B*D) lane-dense slab; pe_ref: (tS, D) window.
    pe = pe_ref[...]
    if pe.dtype != x_ref.dtype:
        # Cast only the small streamed window, never the whole table.
        pe = pe.astype(x_ref.dtype)
    # Per-batch static lane slices: free ref views + pure VPU adds.
    # No (tS, B*D) broadcast temporary is ever materialized in VMEM.
    for b in range(batch):
        lo = b * d_model
        o_ref[:, lo:lo + d_model] = x_ref[:, lo:lo + d_model] + pe


def _scoped_vmem_limit_bytes() -> int:
    # v5e/v6e: 128 MiB physical VMEM -> 64 MiB scoped is free headroom.
    # v7x:     64 MiB physical       -> stay at the 32 MiB scoped default.
    try:
        phys = pltpu.get_tpu_info().vmem_capacity_bytes
    except Exception:
        phys = 64 * 1024 * 1024  # assume the most VMEM-constrained chip (v7x)
    return min(64 * 1024 * 1024, phys // 2)


def positional_encoding(x: jnp.ndarray, pe: jnp.ndarray) -> jnp.ndarray:
    """x: (S, B, D); pe: (max_len, D). Returns x + pe[:S] broadcast over batch."""
    S, B, D = x.shape
    max_len, d_pe = pe.shape
    assert d_pe == D, "pe table width must match d_model"
    assert S <= max_len, "sequence length exceeds positional-encoding table"

    lanes = B * D
    # Row-major (S, B, D) -> (S, B*D) is a relayout-free view; batch-major
    # flattening matches the per-batch lane slices in the kernel.
    x2d = x.reshape(S, lanes)

    itemsize = jnp.dtype(x.dtype).itemsize
    pe_itemsize = jnp.dtype(pe.dtype).itemsize

    # ---------------- row-tile sizing ----------------
    sub = max(8, 32 // itemsize)                 # sublane granule (f32:8, bf16:16, i8:32)

    # HBM bytes moved per row per grid step: x read + out write + pe read.
    row_bytes = 2 * lanes * itemsize + D * pe_itemsize
    # Target ~6 MiB of traffic per step so the ~0.35 us per-step overhead is
    # amortized even for narrow slabs / fast-HBM chips (v7x @ 3.2 TB/s).
    target_step_bytes = 6 * 1024 * 1024
    tS = max(sub, target_step_bytes // row_bytes)

    # Clamp to the *actual* double-buffered VMEM footprint:
    # 2 buffers x (x-in tile + out tile + pe tile).  No hidden temporaries.
    vmem_limit = _scoped_vmem_limit_bytes()
    vmem_budget = vmem_limit - 8 * 1024 * 1024   # headroom for Mosaic scratch
    vmem_row_bytes = 2 * (2 * lanes * itemsize + D * pe_itemsize)
    tS = min(tS, max(sub, vmem_budget // vmem_row_bytes))

    tS = max(sub, (tS // sub) * sub)             # sublane-granule aligned
    tS = min(tS, ((S + sub - 1) // sub) * sub)   # never bigger than needed

    # If everything fits in one grid step but the problem is big enough to be
    # worth splitting, halve the tile so v7x's two TensorCores both get work.
    if pl.cdiv(S, tS) == 1 and S * row_bytes >= 2 * 1024 * 1024:
        half = (S + 1) // 2
        tS = max(sub, ((half + sub - 1) // sub) * sub)

    grid = (pl.cdiv(S, tS),)

    out2d = pl.pallas_call(
        functools.partial(_pos_enc_kernel, batch=B, d_model=D),
        out_shape=jax.ShapeDtypeStruct((S, lanes), x.dtype),
        grid_spec=pltpu.PrefetchScalarGridSpec(
            num_scalar_prefetch=0,
            grid=grid,
            in_specs=[
                pl.BlockSpec((tS, lanes), lambda i: (i, 0)),   # streams x row tiles
                pl.BlockSpec((tS, D), lambda i: (i, 0)),       # window into the full pe table
            ],
            out_specs=pl.BlockSpec((tS, lanes), lambda i: (i, 0)),
        ),
        compiler_params=pltpu.CompilerParams(
            dimension_semantics=("parallel",),   # row tiles independent -> shardable across TCs
            vmem_limit_bytes=vmem_limit,
        ),
    )(x2d, pe)

    return out2d.reshape(S, B, D)


if __name__ == "__main__":
    # Small shapes consistent with the module: seq=8, batch=2, d_model=32.
    # (At this tiny size a standalone kernel is overhead-dominated; the tiling
    #  logic above is what matters for production-sized inputs.)
    S, B, D = 8, 2, 32
    MAX_LEN = 5000

    key = jax.random.PRNGKey(0)
    x = jax.random.normal(key, (S, B, D), dtype=jnp.float32)
    pe = _build_pe_table(D, MAX_LEN, dtype=x.dtype)

    out = jax.block_until_ready(positional_encoding(x, pe))
    ref = x + pe[:S][:, None, :]
    assert out.shape == (S, B, D)
    assert jnp.allclose(out, ref, atol=1e-6), "mismatch vs reference (small case)"

    # Extra check: lane-dense d_model (multiple of 128) and S == max_len, so the
    # last pe window ends exactly at the end of the table.
    S2, B2, D2 = 64, 4, 128
    x2 = jax.random.normal(jax.random.PRNGKey(1), (S2, B2, D2), dtype=jnp.float32)
    pe2 = _build_pe_table(D2, max_len=S2, dtype=x2.dtype)
    out2 = jax.block_until_ready(positional_encoding(x2, pe2))
    ref2 = x2 + pe2[:S2][:, None, :]
    assert jnp.allclose(out2, ref2, atol=1e-6), "mismatch vs reference (dense case)"

    print("KERNEL_OK")
</pallas_src>

<mosaic_0001>
module attributes {stable_mosaic.version = 11 : i64} {
  func.func @_pos_enc_kernel(%arg0: i32, %arg1: memref<8x64xf32, #tpu.memory_space<vmem>>, %arg2: memref<8x32xf32, #tpu.memory_space<vmem>>, %arg3: memref<8x64xf32, #tpu.memory_space<vmem>>) attributes {dimension_semantics = [#tpu.dimension_semantics<parallel>], iteration_bounds = array<i64: 1>, scalar_prefetch = 0 : i64, scratch_operands = 0 : i64, tpu.core_type = #tpu.core_type<tc>, window_params = [{transform_indices = @transform_0, window_bounds = array<i64: 8, 64>}, {transform_indices = @transform_1, window_bounds = array<i64: 8, 32>}, {transform_indices = @transform_2, window_bounds = array<i64: 8, 64>}]} {
    %c0 = arith.constant 0 : index
    %c0_0 = arith.constant 0 : index
    %0 = vector.load %arg2[%c0, %c0_0] : memref<8x32xf32, #tpu.memory_space<vmem>>, vector<8x32xf32>
    %c0_1 = arith.constant 0 : index
    %c0_2 = arith.constant 0 : index
    %1 = vector.load %arg1[%c0_1, %c0_2] : memref<8x64xf32, #tpu.memory_space<vmem>>, vector<8x32xf32>
    %2 = arith.addf %1, %0 : vector<8x32xf32>
    %c0_3 = arith.constant 0 : index
    %c0_4 = arith.constant 0 : index
    %3 = vector.load %arg3[%c0_3, %c0_4] : memref<8x64xf32, #tpu.memory_space<vmem>>, vector<8x32xf32>
    tpu.vector_store %arg3[%c0_3, %c0_4], %2 {strides = array<i32>} : memref<8x64xf32, #tpu.memory_space<vmem>>, vector<8x32xf32>,
    %c0_5 = arith.constant 0 : index
    %c32 = arith.constant 32 : index
    %4 = vector.load %arg1[%c0_5, %c32] : memref<8x64xf32, #tpu.memory_space<vmem>>, vector<8x32xf32>
    %5 = arith.addf %4, %0 : vector<8x32xf32>
    %c0_6 = arith.constant 0 : index
    %c32_7 = arith.constant 32 : index
    %6 = vector.load %arg3[%c0_6, %c32_7] : memref<8x64xf32, #tpu.memory_space<vmem>>, vector<8x32xf32>
    tpu.vector_store %arg3[%c0_6, %c32_7], %5 {strides = array<i32>} : memref<8x64xf32, #tpu.memory_space<vmem>>, vector<8x32xf32>,
    return
  }
  func.func @transform_0(%arg0: i32) -> (i32, i32) {
    %c0_i32 = arith.constant 0 : i32
    %c0_i32_0 = arith.constant 0 : i32
    return %arg0, %c0_i32 : i32, i32
  }
  func.func @transform_1(%arg0: i32) -> (i32, i32) {
    %c0_i32 = arith.constant 0 : i32
    %c0_i32_0 = arith.constant 0 : i32
    return %arg0, %c0_i32 : i32, i32
  }
  func.func @transform_2(%arg0: i32) -> (i32, i32) {
    %c0_i32 = arith.constant 0 : i32
    %c0_i32_0 = arith.constant 0 : i32
    return %arg0, %c0_i32 : i32, i32
  }
}

</mosaic_0001>

<bundles_post_ra>
// kernel: tpu_custom_call.1
= control target key start
LH: loop header
LB: loop body
LE: loop exit
PB: predicated region body
PF: predicated region fallthrough
CT: control target
= control target key end

     0   :  { %vm15_vm0 = vcmask 261120   ;;  %s100_s0 = inlined_call_operand.vmem [shape: f32[8,64], index: 0, kind: input, shape index: {}]   ;;  %s101_s1 = inlined_call_operand.vmem [shape: f32[5000,32], index: 1, kind: input, shape index: {}]   ;;  %s102_s2 = inlined_call_operand.hbm [shape: f32[8,64], index: 2, kind: output, shape index: {}]  }
   0x1   :  { %v12_v0 = vld [vmem:[%s101_s1] sm:$0xff] }
   0x2   :  { %v13_v1 = vld [vmem:[%s100_s0] sm:$0xff] }
   0x3   :  { %7 = vsyncpa [#allocation3], 0  ;;  %v14_v2 = vadd.f32 %v13_v1, %v12_v0  ;;  %s65_s13 = smov 32   ;;  %s66_s14 = smov [#allocation2]   ;;  %vm23_vm1 = vcmask 523520  }
   0x4   :  { %19 = vrot.lane.b32.xlu0 %v12_v0, %s65_s13  ;;  %s31_s15 = sshll.u32 %s66_s14, 4  ;;  %s32_s15 = int_to_ptr.vmem [resolvable:$true] %s31_s15 }
   0x5   :  { %16 = vst.msk [vmem:[#allocation2] sm:$0xff] %vm15_vm0, %v14_v2  ;;  %s41_s16 = scalar_lea.vmem %s32_s15, 128  ;;  %p46_p1 = scmp.lt.s32.totalorder %s32_s15, %s32_s15 }
   0x6   :  { %p42_p0 = scmp.ne.s32.totalorder %s32_s15, %s41_s16  ;;  %p47_p2 = scmp.lt.s32.totalorder %s41_s16, %s41_s16 }
   0x8   :  { %p48_p3 = por %p47_p2, %p46_p1 }
   0xa   :  { %p49_p4 = pnand %p48_p3, %p42_p0 }
  0x76   :  { %v20_v3 = vpop.permute.xlu0 %19 }
  0x77   :  { %v22_v4 = vadd.f32 %v20_v3, %v13_v1 }
  0x79   :  { %24 = vst.msk [vmem:[#allocation2] sm:$0xff] %vm23_vm1, %v22_v4 }
  0x7a   :  { %52 = shalt.err (!%p49_p4)
}
  0x7b   :  { %s53_s17 = scalar_lea.hbm %s102_s2, 128 }
  0x7c   :  { %p54_p5 = scmp.ne.s32.totalorder %s102_s2, %s53_s17  ;;  %p57_p6 = scmp.lt.u32.totalorder %s53_s17, %s102_s2 }
  0x7e   :  { %p59_p7 = pnand %p57_p6, %p54_p5 }
  0x80   :  { %62 = shalt.err (!%p59_p7)
}
  0x81   :  { %34 = dma.vmem_to_hbm [thread:$0]  %s32_s15, 128, %s102_s2, [#allocation3]  }
  0x82   :  { %63 = dma.done.wait [#allocation3], 128  }
  0x83   :  { %64 = vsyncadd [#allocation3], 4294967168 }
  0x84   :  { %38 = vsyncpa [#allocation3], 1 }

</bundles_post_ra>
